<compile_context>
chip_gen: v7x
topology: tpu7x:2x2x1
jax: 0.10.0
libtpu: 0.0.40
codegen_flags: <defaults>
</compile_context>

<pallas_src>
import functools

import jax
import jax.numpy as jnp
from jax.experimental import pallas as pl
from jax.experimental.pallas import tpu as pltpu


def _round_up(x, m):
    return ((x + m - 1) // m) * m


def _mlp_kernel(x_ref, *refs, layer_residual, last_op):
    """Fused pointwise-MLP kernel.

    x_ref : (C0, tile_n)  one tile of points, channels on sublanes, points on lanes
    refs  : per layer either (w, b) or, for residual layers, (w_y, w_f, b),
            followed by out_ref.
            w   : (C_out, C_in)    w_y : (C_out, C_prev)   w_f : (C_out, C0)
            b   : (C_out, 1)
    """
    out_ref = refs[-1]
    params = refs[:-1]

    x = x_ref[...].astype(jnp.float32)   # original feature (tmpy), f32 accumulate
    y = x
    n_layers = len(layer_residual)
    p = 0
    for l, residual in enumerate(layer_residual):
        if residual:
            w_y = params[p][...]
            w_f = params[p + 1][...]
            b = params[p + 2][...]
            p += 3
            # conv over concat([y, tmpy], channel) == split matmul
            y = (jnp.dot(w_y, y, preferred_element_type=jnp.float32)
                 + jnp.dot(w_f, x, preferred_element_type=jnp.float32)
                 + b)
        else:
            w = params[p][...]
            b = params[p + 1][...]
            p += 2
            y = jnp.dot(w, y, preferred_element_type=jnp.float32) + b
        if l != n_layers - 1:
            # F.leaky_relu default negative_slope = 0.01
            y = jnp.where(y > 0, y, 0.01 * y)
        # TODO(synk): num_views > 1 mid-network view averaging not implemented
        # (it mixes rows across batch groups); num_views == 1 makes it a no-op.

    if last_op == "sigmoid":
        y = jax.nn.sigmoid(y)

    out_ref[...] = y.astype(out_ref.dtype)


def surface_classifier_forward(feature, weights, biases, *, no_residual=False,
                               num_views=1, last_op="sigmoid", tile_n=2048,
                               stream_dtype=jnp.float32):
    """feature: (B, C0, N), like the PyTorch module's input.

    weights[l]: (C_out_l, C_in_total_l)  (PyTorch Conv1d weight squeezed)
    biases[l]:  (C_out_l,)
    Returns (B, C_last, N) float32.
    """
    assert num_views == 1, "only num_views == 1 supported in this kernel"
    B, C0, N = feature.shape
    n_layers = len(weights)
    c_last = weights[-1].shape[0]

    # Tile along N (lane-dense).  Clamp the tile to the (128-rounded) problem
    # size so small problems don't over-pad, then zero-pad N to a tile multiple.
    tile_n = max(128, min(tile_n, _round_up(N, 128)))
    tile_n = _round_up(tile_n, 128)
    n_pad = _round_up(N, tile_n)

    x = jnp.asarray(feature, stream_dtype)
    if n_pad != N:
        x = jnp.pad(x, ((0, 0), (0, 0), (0, n_pad - N)))

    grid = (B, n_pad // tile_n)

    # Build operands: x tile + resident weights/biases (residual weights split).
    in_specs = [pl.BlockSpec((None, C0, tile_n), lambda b, j: (b, 0, j))]
    operands = [x]
    layer_residual = []
    for l, (w, bvec) in enumerate(zip(weights, biases)):
        w = jnp.asarray(w, jnp.float32)
        bcol = jnp.asarray(bvec, jnp.float32).reshape(-1, 1)
        residual = (not no_residual) and (l != 0)
        layer_residual.append(residual)
        if residual:
            c_prev = weights[l - 1].shape[0]      # channels of y entering layer l
            mats = (w[:, :c_prev], w[:, c_prev:], bcol)
        else:
            mats = (w, bcol)
        for m in mats:
            in_specs.append(pl.BlockSpec(m.shape, lambda b, j: (0, 0)))
            operands.append(m)

    kernel = functools.partial(_mlp_kernel,
                               layer_residual=tuple(layer_residual),
                               last_op=last_op)

    # Cost estimate (advisory, helps XLA schedule around the custom call).
    flops = sum(2 * B * N * int(w.shape[0]) * int(w.shape[1]) for w in weights)
    transcendentals = B * N * c_last if last_op == "sigmoid" else 0
    param_bytes = 4 * sum(int(w.size) for w in weights) + 4 * sum(int(b.size) for b in biases)
    itemsize = jnp.dtype(stream_dtype).itemsize
    bytes_accessed = B * n_pad * C0 * itemsize + B * n_pad * c_last * 4 + param_bytes
    cost = pl.CostEstimate(flops=flops, transcendentals=transcendentals,
                           bytes_accessed=bytes_accessed)

    # VMEM budget: double-buffered x/out tiles + resident params + f32 live
    # intermediates; give headroom but stay within every generation's limit.
    max_ch = max([C0] + [int(w.shape[0]) for w in weights])
    vmem_est = (2 * C0 * tile_n * itemsize
                + 2 * c_last * tile_n * 4
                + param_bytes
                + 3 * max_ch * tile_n * 4)
    vmem_limit = int(min(max(4 * vmem_est, 32 * 1024 * 1024), 64 * 1024 * 1024))

    out_padded = pl.pallas_call(
        kernel,
        out_shape=jax.ShapeDtypeStruct((B, c_last, n_pad), jnp.float32),
        grid=grid,
        in_specs=in_specs,
        out_specs=pl.BlockSpec((None, c_last, tile_n), lambda b, j: (b, 0, j)),
        compiler_params=pltpu.CompilerParams(
            dimension_semantics=("parallel", "parallel"),
            vmem_limit_bytes=vmem_limit),
        cost_estimate=cost,
    )(*operands)

    if n_pad != N:
        out_padded = out_padded[:, :, :N]
    return out_padded


def _reference_forward(feature, weights, biases, *, no_residual, last_op):
    """Pure-JAX reference mirroring the PyTorch forward (num_views=1)."""
    y = feature
    tmpy = feature
    n = len(weights)
    for i, (w, b) in enumerate(zip(weights, biases)):
        inp = y if (no_residual or i == 0) else jnp.concatenate([y, tmpy], axis=1)
        # Conv1d with kernel 1: (B, Cin, N) -> (B, Cout, N)
        y = jnp.einsum("oc,bcn->bon", w, inp) + b[None, :, None]
        if i != n - 1:
            y = jnp.where(y > 0, y, 0.01 * y)
    if last_op == "sigmoid":
        y = jax.nn.sigmoid(y)
    return y


if __name__ == "__main__":
    # Small PIFu-like config: residual MLP with sigmoid last_op, num_views=1.
    filter_channels = [16, 32, 32, 1]
    last_op = "sigmoid"
    B, C0, N = 2, filter_channels[0], 500   # N not a multiple of 128 -> padding path

    key = jax.random.PRNGKey(0)
    k_feat, k_params = jax.random.split(key)
    feature = jax.random.normal(k_feat, (B, C0, N), dtype=jnp.float32)

    def make_params(no_residual, base_key):
        ws, bs = [], []
        keys = jax.random.split(base_key, len(filter_channels) - 1)
        for l in range(len(filter_channels) - 1):
            c_in = filter_channels[l] if (no_residual or l == 0) \
                else filter_channels[l] + filter_channels[0]
            c_out = filter_channels[l + 1]
            kw, kb = jax.random.split(keys[l])
            bound = 1.0 / (c_in ** 0.5)   # roughly Conv1d's uniform fan-in init
            ws.append(jax.random.uniform(kw, (c_out, c_in), jnp.float32, -bound, bound))
            bs.append(jax.random.uniform(kb, (c_out,), jnp.float32, -bound, bound))
        return ws, bs

    # 1) Residual MLP, f32 streaming -- strict check.
    w_res, b_res = make_params(False, k_params)
    out = surface_classifier_forward(feature, w_res, b_res, no_residual=False,
                                     num_views=1, last_op=last_op)
    out = jax.block_until_ready(out)
    ref = _reference_forward(feature, w_res, b_res, no_residual=False, last_op=last_op)
    assert out.shape == (B, filter_channels[-1], N)
    assert jnp.allclose(out, ref, atol=1e-5, rtol=1e-5)

    # 2) Residual MLP, bf16 streaming (f32 accumulation) -- relaxed check.
    out_bf16 = surface_classifier_forward(feature, w_res, b_res, no_residual=False,
                                          num_views=1, last_op=last_op,
                                          stream_dtype=jnp.bfloat16)
    out_bf16 = jax.block_until_ready(out_bf16)
    assert jnp.allclose(out_bf16, ref, atol=2e-2, rtol=2e-2)

    # 3) no_residual=True path, f32 -- strict check.
    w_nr, b_nr = make_params(True, jax.random.fold_in(k_params, 1))
    out_nr = surface_classifier_forward(feature, w_nr, b_nr, no_residual=True,
                                        num_views=1, last_op=last_op)
    out_nr = jax.block_until_ready(out_nr)
    ref_nr = _reference_forward(feature, w_nr, b_nr, no_residual=True, last_op=last_op)
    assert jnp.allclose(out_nr, ref_nr, atol=1e-5, rtol=1e-5)

    print("KERNEL_OK")
</pallas_src>

<mosaic_0001>
module attributes {stable_mosaic.version = 11 : i64} {
  func.func @_mlp_kernel(%arg0: i32, %arg1: i32, %arg2: memref<1x16x512xf32, #tpu.memory_space<vmem>>, %arg3: memref<32x16xf32, #tpu.memory_space<vmem>>, %arg4: memref<32x1xf32, #tpu.memory_space<vmem>>, %arg5: memref<32x32xf32, #tpu.memory_space<vmem>>, %arg6: memref<32x16xf32, #tpu.memory_space<vmem>>, %arg7: memref<32x1xf32, #tpu.memory_space<vmem>>, %arg8: memref<1x32xf32, #tpu.memory_space<vmem>>, %arg9: memref<1x16xf32, #tpu.memory_space<vmem>>, %arg10: memref<1x1xf32, #tpu.memory_space<vmem>>, %arg11: memref<1x1x512xf32, #tpu.memory_space<vmem>>) attributes {dimension_semantics = [#tpu.dimension_semantics<parallel>, #tpu.dimension_semantics<parallel>], iteration_bounds = array<i64: 2, 1>, scalar_prefetch = 0 : i64, scratch_operands = 0 : i64, tpu.core_type = #tpu.core_type<tc>, window_params = [{transform_indices = @transform_0, window_bounds = array<i64: 1, 16, 512>}, {pipeline_mode = #tpu.pipeline_mode<synchronous>, transform_indices = @transform_1, window_bounds = array<i64: 32, 16>}, {pipeline_mode = #tpu.pipeline_mode<synchronous>, transform_indices = @transform_2, window_bounds = array<i64: 32, 1>}, {pipeline_mode = #tpu.pipeline_mode<synchronous>, transform_indices = @transform_3, window_bounds = array<i64: 32, 32>}, {pipeline_mode = #tpu.pipeline_mode<synchronous>, transform_indices = @transform_4, window_bounds = array<i64: 32, 16>}, {pipeline_mode = #tpu.pipeline_mode<synchronous>, transform_indices = @transform_5, window_bounds = array<i64: 32, 1>}, {pipeline_mode = #tpu.pipeline_mode<synchronous>, transform_indices = @transform_6, window_bounds = array<i64: 1, 32>}, {pipeline_mode = #tpu.pipeline_mode<synchronous>, transform_indices = @transform_7, window_bounds = array<i64: 1, 16>}, {pipeline_mode = #tpu.pipeline_mode<synchronous>, transform_indices = @transform_8, window_bounds = array<i64: 1, 1>}, {transform_indices = @transform_9, window_bounds = array<i64: 1, 1, 512>}]} {
    %c0 = arith.constant 0 : index
    %c0_0 = arith.constant 0 : index
    %c0_1 = arith.constant 0 : index
    %0 = vector.load %arg2[%c0, %c0_0, %c0_1] : memref<1x16x512xf32, #tpu.memory_space<vmem>>, vector<1x16x512xf32>
    %1 = vector.shape_cast %0 : vector<1x16x512xf32> to vector<16x512xf32>
    %c0_2 = arith.constant 0 : index
    %c0_3 = arith.constant 0 : index
    %2 = vector.load %arg3[%c0_2, %c0_3] : memref<32x16xf32, #tpu.memory_space<vmem>>, vector<32x16xf32>
    %c0_4 = arith.constant 0 : index
    %c0_5 = arith.constant 0 : index
    %3 = vector.load %arg4[%c0_4, %c0_5] : memref<32x1xf32, #tpu.memory_space<vmem>>, vector<32x1xf32>
    %cst = arith.constant dense<0.000000e+00> : vector<32x512xf32>
    %4 = tpu.matmul %2, %1, %cst {dimension_numbers = #tpu.dot_dimension_numbers<[1], [0], [0], [1], [0, 0, 1, 1], [], []>} : vector<32x16xf32>, vector<16x512xf32>, vector<32x512xf32> -> vector<32x512xf32>
    %5 = vector.broadcast %3 : vector<32x1xf32> to vector<32x512xf32>
    %6 = arith.addf %4, %5 : vector<32x512xf32>
    %cst_6 = arith.constant 0.000000e+00 : f32
    %7 = vector.broadcast %cst_6 : f32 to vector<32x512xf32>
    %8 = arith.cmpf ogt, %6, %7 : vector<32x512xf32>
    %cst_7 = arith.constant 0.00999999977 : f32
    %9 = vector.broadcast %cst_7 : f32 to vector<32x512xf32>
    %10 = arith.mulf %9, %6 : vector<32x512xf32>
    %11 = arith.select %8, %6, %10 : vector<32x512xi1>, vector<32x512xf32>
    %c0_8 = arith.constant 0 : index
    %c0_9 = arith.constant 0 : index
    %12 = vector.load %arg5[%c0_8, %c0_9] : memref<32x32xf32, #tpu.memory_space<vmem>>, vector<32x32xf32>
    %c0_10 = arith.constant 0 : index
    %c0_11 = arith.constant 0 : index
    %13 = vector.load %arg6[%c0_10, %c0_11] : memref<32x16xf32, #tpu.memory_space<vmem>>, vector<32x16xf32>
    %c0_12 = arith.constant 0 : index
    %c0_13 = arith.constant 0 : index
    %14 = vector.load %arg7[%c0_12, %c0_13] : memref<32x1xf32, #tpu.memory_space<vmem>>, vector<32x1xf32>
    %cst_14 = arith.constant dense<0.000000e+00> : vector<32x512xf32>
    %15 = tpu.matmul %12, %11, %cst_14 {dimension_numbers = #tpu.dot_dimension_numbers<[1], [0], [0], [1], [0, 0, 1, 1], [], []>} : vector<32x32xf32>, vector<32x512xf32>, vector<32x512xf32> -> vector<32x512xf32>
    %cst_15 = arith.constant dense<0.000000e+00> : vector<32x512xf32>
    %16 = tpu.matmul %13, %1, %cst_15 {dimension_numbers = #tpu.dot_dimension_numbers<[1], [0], [0], [1], [0, 0, 1, 1], [], []>} : vector<32x16xf32>, vector<16x512xf32>, vector<32x512xf32> -> vector<32x512xf32>
    %17 = arith.addf %15, %16 : vector<32x512xf32>
    %18 = vector.broadcast %14 : vector<32x1xf32> to vector<32x512xf32>
    %19 = arith.addf %17, %18 : vector<32x512xf32>
    %cst_16 = arith.constant 0.000000e+00 : f32
    %20 = vector.broadcast %cst_16 : f32 to vector<32x512xf32>
    %21 = arith.cmpf ogt, %19, %20 : vector<32x512xf32>
    %cst_17 = arith.constant 0.00999999977 : f32
    %22 = vector.broadcast %cst_17 : f32 to vector<32x512xf32>
    %23 = arith.mulf %22, %19 : vector<32x512xf32>
    %24 = arith.select %21, %19, %23 : vector<32x512xi1>, vector<32x512xf32>
    %c0_18 = arith.constant 0 : index
    %c0_19 = arith.constant 0 : index
    %25 = vector.load %arg8[%c0_18, %c0_19] : memref<1x32xf32, #tpu.memory_space<vmem>>, vector<1x32xf32>
    %c0_20 = arith.constant 0 : index
    %c0_21 = arith.constant 0 : index
    %26 = vector.load %arg9[%c0_20, %c0_21] : memref<1x16xf32, #tpu.memory_space<vmem>>, vector<1x16xf32>
    %c0_22 = arith.constant 0 : index
    %c0_23 = arith.constant 0 : index
    %27 = vector.load %arg10[%c0_22, %c0_23] : memref<1x1xf32, #tpu.memory_space<vmem>>, vector<1x1xf32>
    %cst_24 = arith.constant dense<0.000000e+00> : vector<1x512xf32>
    %28 = tpu.matmul %25, %24, %cst_24 {dimension_numbers = #tpu.dot_dimension_numbers<[1], [0], [0], [1], [0, 0, 1, 1], [], []>} : vector<1x32xf32>, vector<32x512xf32>, vector<1x512xf32> -> vector<1x512xf32>
    %cst_25 = arith.constant dense<0.000000e+00> : vector<1x512xf32>
    %29 = tpu.matmul %26, %1, %cst_25 {dimension_numbers = #tpu.dot_dimension_numbers<[1], [0], [0], [1], [0, 0, 1, 1], [], []>} : vector<1x16xf32>, vector<16x512xf32>, vector<1x512xf32> -> vector<1x512xf32>
    %30 = arith.addf %28, %29 : vector<1x512xf32>
    %31 = vector.broadcast %27 : vector<1x1xf32> to vector<1x512xf32>
    %32 = arith.addf %30, %31 : vector<1x512xf32>
    %33 = arith.negf %32 : vector<1x512xf32>
    %34 = math.exp %33 : vector<1x512xf32>
    %cst_26 = arith.constant 1.000000e+00 : f32
    %35 = vector.broadcast %cst_26 : f32 to vector<1x512xf32>
    %36 = arith.addf %35, %34 : vector<1x512xf32>
    %37 = arith.divf %35, %36 : vector<1x512xf32>
    %c0_27 = arith.constant 0 : index
    %c0_28 = arith.constant 0 : index
    %c0_29 = arith.constant 0 : index
    %38 = vector.load %arg11[%c0_27, %c0_28, %c0_29] : memref<1x1x512xf32, #tpu.memory_space<vmem>>, vector<1x1x512xf32>
    %39 = vector.shape_cast %38 : vector<1x1x512xf32> to vector<1x512xf32>
    %40 = vector.shape_cast %37 : vector<1x512xf32> to vector<1x1x512xf32>
    tpu.vector_store %arg11[%c0_27, %c0_28, %c0_29], %40 {strides = array<i32>} : memref<1x1x512xf32, #tpu.memory_space<vmem>>, vector<1x1x512xf32>,
    return
  }
  func.func @transform_0(%arg0: i32, %arg1: i32) -> (i32, i32, i32) {
    %c0_i32 = arith.constant 0 : i32
    %c0_i32_0 = arith.constant 0 : i32
    return %arg0, %c0_i32, %arg1 : i32, i32, i32
  }
  func.func @transform_1(%arg0: i32, %arg1: i32) -> (i32, i32) {
    %c0_i32 = arith.constant 0 : i32
    %c0_i32_0 = arith.constant 0 : i32
    %c0_i32_1 = arith.constant 0 : i32
    return %c0_i32, %c0_i32_0 : i32, i32
  }
  func.func @transform_2(%arg0: i32, %arg1: i32) -> (i32, i32) {
    %c0_i32 = arith.constant 0 : i32
    %c0_i32_0 = arith.constant 0 : i32
    %c0_i32_1 = arith.constant 0 : i32
    return %c0_i32, %c0_i32_0 : i32, i32
  }
  func.func @transform_3(%arg0: i32, %arg1: i32) -> (i32, i32) {
    %c0_i32 = arith.constant 0 : i32
    %c0_i32_0 = arith.constant 0 : i32
    %c0_i32_1 = arith.constant 0 : i32
    return %c0_i32, %c0_i32_0 : i32, i32
  }
  func.func @transform_4(%arg0: i32, %arg1: i32) -> (i32, i32) {
    %c0_i32 = arith.constant 0 : i32
    %c0_i32_0 = arith.constant 0 : i32
    %c0_i32_1 = arith.constant 0 : i32
    return %c0_i32, %c0_i32_0 : i32, i32
  }
  func.func @transform_5(%arg0: i32, %arg1: i32) -> (i32, i32) {
    %c0_i32 = arith.constant 0 : i32
    %c0_i32_0 = arith.constant 0 : i32
    %c0_i32_1 = arith.constant 0 : i32
    return %c0_i32, %c0_i32_0 : i32, i32
  }
  func.func @transform_6(%arg0: i32, %arg1: i32) -> (i32, i32) {
    %c0_i32 = arith.constant 0 : i32
    %c0_i32_0 = arith.constant 0 : i32
    %c0_i32_1 = arith.constant 0 : i32
    return %c0_i32, %c0_i32_0 : i32, i32
  }
  func.func @transform_7(%arg0: i32, %arg1: i32) -> (i32, i32) {
    %c0_i32 = arith.constant 0 : i32
    %c0_i32_0 = arith.constant 0 : i32
    %c0_i32_1 = arith.constant 0 : i32
    return %c0_i32, %c0_i32_0 : i32, i32
  }
  func.func @transform_8(%arg0: i32, %arg1: i32) -> (i32, i32) {
    %c0_i32 = arith.constant 0 : i32
    %c0_i32_0 = arith.constant 0 : i32
    %c0_i32_1 = arith.constant 0 : i32
    return %c0_i32, %c0_i32_0 : i32, i32
  }
  func.func @transform_9(%arg0: i32, %arg1: i32) -> (i32, i32, i32) {
    %c0_i32 = arith.constant 0 : i32
    %c0_i32_0 = arith.constant 0 : i32
    return %arg0, %c0_i32, %arg1 : i32, i32, i32
  }
}

</mosaic_0001>

<bundles_post_ra>
// kernel: tpu_custom_call.1
= control target key start
LH: loop header
LB: loop body
LE: loop exit
PB: predicated region body
PF: predicated region fallthrough
CT: control target
= control target key end

     0   :  { %s2179_s0 = inlined_call_operand.vmem [shape: f32[2,16,512], index: 0, kind: input, shape index: {}]   ;;  %s2180_s1 = inlined_call_operand.vmem [shape: f32[32,16], index: 1, kind: input, shape index: {}]   ;;  %s2181_s2 = inlined_call_operand.vmem [shape: f32[32,1], index: 2, kind: input, shape index: {}]   ;;  %s2182_s3 = inlined_call_operand.vmem [shape: f32[32,32], index: 3, kind: input, shape index: {}]   ;;  %s2183_s4 = inlined_call_operand.vmem [shape: f32[32,16], index: 4, kind: input, shape index: {}]   ;;  %s2184_s5 = inlined_call_operand.vmem [shape: f32[32,1], index: 5, kind: input, shape index: {}]   ;;  %s2185_s6 = inlined_call_operand.vmem [shape: f32[1,32], index: 6, kind: input, shape index: {}]   ;;  %s2186_s7 = inlined_call_operand.vmem [shape: f32[1,16], index: 7, kind: input, shape index: {}]   ;;  %s2187_s8 = inlined_call_operand.<no memory space> [shape: f32[1,1], index: 8, kind: input, shape index: {}]   ;;  %s2188_s9 = inlined_call_operand.hbm [shape: f32[2,1,512], index: 9, kind: output, shape index: {}]  }
   0x1   :  { %v14_v0 = vstv %s2187_s8 }
   0x2   :  { %15 = vst [vmem:[#allocation2] sm:$0x1] %v14_v0 }
   0x3   :  { %16 = vsyncpa [#allocation4], 0 }
   0x4   :  { %18 = vsyncpa [#allocation4 + $0x1], 0  ;;  %s1909_s11 = smov 0   ;;  %s1911_s12 = smov 0  }
   0x5   :  { %s1913_s13 = smov 0   ;;  %s1915_s14 = smov 0  }
   0x6   :  { %s1917_s15 = smov 0   ;;  %s1919_s16 = smov 0  }
   0x7 LB: > { %s1573_s8 = sadd.s32 4294967295, %s1850_s16   ;;  %s1574_s17 = sadd.s32 4294967294, %s1850_s16   ;;  %s1850_s16 = sphi %s1919_s16, %s24_s16   ;;  %s1846_s15 = sphi %s1917_s15, %s2195_s15   ;;  %s1842_s14 = sphi %s1915_s14, %s2194_s14   ;;  %s1838_s13 = sphi %s1913_s13, %s2193_s13   ;;  %s1834_s12 = sphi %s1911_s12, %s2192_s12   ;;  %s1830_s11 = sphi %s1909_s11, %s2191_s11  }
   0x8   : > { %s36_s18 = sadd.s32 1, %s1846_s15  ;;  %s241_s19 = sadd.s32 1, %s1838_s13 }
   0x9   : > { %p38_p0 = scmp.ge.s32.totalorder %s36_s18, 2  ;;  %p251_p1 = scmp.ne.s32.totalorder %s1838_s13, %s1834_s12 }
   0xa   : > { %p252_p2 = scmp.eq.s32.totalorder %s1573_s8, 1  ;;  %p257_p3 = scmp.ne.s32.totalorder %s1834_s12, %s1830_s11 }
   0xb   : > { %s2197_s18 = smov (%p38_p0, %s36_s18), 0  ;;  %p258_p5 = scmp.eq.s32.totalorder %s1574_s17, 1 }
   0xc   : > { %p1949_p4 = por %p252_p2, %p251_p1  ;;  %s236_s21 = ssub.s32 %s1846_s15, %s2197_s18 }
   0xd   : > { %p1577_p6 = scmp.ge.s32.totalorder %s1850_s16, 1  ;;  %p239_p7 = scmp.eq.s32.totalorder %s236_s21, 0 }
   0xe   : > { %p1956_p8 = por %p258_p5, %p257_p3  ;;  %p313_p9 = scmp.lt.s32.totalorder %s1850_s16, 3 }
   0xf   : > { %s1962_s23 = scalar_select %p239_p7, %s1838_s13, %s241_s19  }
  0x10   : > { %p314_p10 = pnand %p1577_p6, %p313_p9 }
  0x11   : > { %p354_p11 = scmp.lt.s32.totalorder (!%p314_p10), %s1842_s14, 1  ;;  %v1852_v1 = vmov (!%p314_p10), 0.0   ;;  %v376_v2 = vld [vmem:[%s2181_s2] sm:$0xff] (!%p314_p10)  ;;  %v1853_v3 = vmov (!%p314_p10), 0   ;;  %v378_v4 = vld [vmem:[%s2181_s2 + $0x10] sm:$0xff] (!%p314_p10)  ;;  %v377_v5 = vld [vmem:[%s2181_s2 + $0x8] sm:$0xff] (!%p314_p10) }
  0x12   : > { %317 = sbr.rel (%p314_p10) target bundleno = 776 (0x308), region = 56  ;;  %477 = vmatprep.mubr.f32.mxu0 (!%p314_p10), %v1852_v1  ;;  %566 = vmatprep.mubr.f32.mxu1 (!%p314_p10), %v1852_v1  ;;  %v379_v6 = vld [vmem:[%s2181_s2 + $0x18] sm:$0xff] (!%p314_p10)  ;;  %v647_v18 = vld [vmem:[%s2184_s5] sm:$0xff] (!%p314_p10)  ;;  %v648_v20 = vld [vmem:[%s2184_s5 + $0x8] sm:$0xff] (!%p314_p10)  ;;  %vm400_vm0 = vcmask (!%p314_p10), 130048   ;;  %s350_s25 = sand.u32 (!%p314_p10), 1, %s1834_s12  }
  0x13   : > { %1754 = vset.pattern.permute.xlu0 (!%p314_p10), %v1853_v3  ;;  %1755 = vset.pattern.permute.xlu1 (!%p314_p10), %v1853_v3  ;;  %v372_v21 = vld [vmem:[%s2180_s1] sm:$0xff] (!%p314_p10)  ;;  %v649_v22 = vld [vmem:[%s2184_s5 + $0x10] sm:$0xff] (!%p314_p10)  ;;  %v650_v23 = vld [vmem:[%s2184_s5 + $0x18] sm:$0xff] (!%p314_p10)  ;;  %s1619_s27 = sshll.u32 (!%p314_p10), %s1842_s14, 6  ;;  %s1481_s17 = scalar_lea.sflag (!%p314_p10), [#allocation4], %s350_s25 }
  0x14   : > { %382 = vperm.xlu0 (!%p314_p10), %1754, %v376_v2   ;;  %392 = vperm.xlu1 (!%p314_p10), %1755, %v378_v4   ;;  %v373_v24 = vld [vmem:[%s2180_s1 + $0x8] sm:$0xff] (!%p314_p10)  ;;  %v1118_v25 = vld [vmem:[#allocation2] sm:$0x1] (!%p314_p10)  ;;  %v374_v26 = vld [vmem:[%s2180_s1 + $0x10] sm:$0xff] (!%p314_p10)  ;;  %s2132_s8 = scalar_lea.hbm (!%p314_p10), %s2188_s9, %s1619_s27 }
  0x15   : > { %v375_v27 = vld [vmem:[%s2180_s1 + $0x18] sm:$0xff] (!%p314_p10)  ;;  %v643_v28 = vld [vmem:[%s2183_s4] sm:$0xff] (!%p314_p10)  ;;  %v644_v29 = vld [vmem:[%s2183_s4 + $0x8] sm:$0xff] (!%p314_p10) }
  0x16   : > { %v645_v30 = vld [vmem:[%s2183_s4 + $0x10] sm:$0xff] (!%p314_p10)  ;;  %v646_v31 = vld [vmem:[%s2183_s4 + $0x18] sm:$0xff] (!%p314_p10) }
  0x18   : > { %387 = vperm.xlu0 (!%p314_p10), %1754, %v377_v5   ;;  %397 = vperm.xlu1 (!%p314_p10), %1755, %v379_v6  }
  0x19   : > { %s355_s26 = scalar_select %p354_p11, %s1842_s14, 1 }
  0x1a   : > { %s1855_s14 = smov [#allocation3]  }
  0x1b   : > { %s1618_s29 = sshll.u32 %s355_s26, 6  ;;  %s1578_s26 = sshll.u32 %s350_s25, 2 }
  0x1c   : > { %s361_s24 = scalar_lea.vmem %s2179_s0, %s1618_s29  ;;  %1034 = vperm.xlu0 %1754, %v647_v18   ;;  %1039 = vperm.xlu1 %1755, %v648_v20   ;;  %s352_s28 = scalar_lea.vmem [#allocation3], %s1578_s26 }
  0x1d   : > { %v365_v7 = vld [vmem:[%s361_s24 + $0x8] sm:$0xff]  ;;  %v367_v9 = vld [vmem:[%s361_s24 + $0x18] sm:$0xff]  ;;  %v364_v12 = vld [vmem:[%s361_s24] sm:$0xff]  ;;  %s1497_s29 = sshll.u32 %s352_s28, 4  ;;  %s1776_s21 = sshll.u32 %s1855_s14, 4  ;;  %s2134_s29 = int_to_ptr.vmem [resolvable:$true] %s1497_s29  ;;  %s1777_s21 = int_to_ptr.vmem [resolvable:$false] %s1776_s21 }
  0x1e   : > { %v369_v8 = vld [vmem:[%s361_s24 + $0x28] sm:$0xff]  ;;  %v371_v11 = vld [vmem:[%s361_s24 + $0x38] sm:$0xff]  ;;  %v368_v13 = vld [vmem:[%s361_s24 + $0x20] sm:$0xff]  ;;  %s1772_s19 = scalar_lea.vmem %s2134_s29, 64  ;;  %p1779_p1 = scmp.lt.s32.totalorder %s2134_s29, %s1777_s21 }
  0x1f   : > { %v1983_v10 = vpack.c.bf16 %v369_v8, %v365_v7  ;;  %v1985_v14 = vpack.c.bf16 %v371_v11, %v367_v9  ;;  %v1987_v15 = vpack.c.bf16 %v368_v13, %v364_v12  ;;  %v366_v16 = vld [vmem:[%s361_s24 + $0x10] sm:$0xff]  ;;  %p1773_p12 = scmp.ne.s32.totalorder %s2134_s29, %s1772_s19 }
  0x20   : > { %v370_v17 = vld [vmem:[%s361_s24 + $0x30] sm:$0xff]  ;;  %1044 = vperm.xlu0 %1754, %v649_v22   ;;  %1049 = vperm.xlu1 %1755, %v650_v23   ;;  %s1778_s24 = scalar_lea.vmem %s1777_s21, 128 }
  0x21   : > { %1621 = vmatprep.subr.bf16.mxu0 %v1983_v10  ;;  %v1993_v19 = vpack.c.bf16 %v370_v17, %v366_v16  ;;  %1625 = vmatprep.subr.bf16.mxu1 %v1985_v14  ;;  %p1774_p13 = pnand %p1773_p12, %p1949_p4  ;;  %p1780_p2 = scmp.lt.s32.totalorder %s1778_s24, %s1772_s19 }
  0x22   : > { %1623 = vmatpush1.bf16.msra.mxu0 %v1987_v15 }
  0x23   : > { %1627 = vmatpush1.bf16.msra.mxu1 %v1993_v19  ;;  %1629 = vmatprep.subr.bf16.mxu0 %v1983_v10  ;;  %p1775_p0 = pneg %p1774_p13  ;;  %p1781_p3 = por %p1780_p2, %p1779_p1 }
  0x24   : > { %1633 = vmatprep.subr.bf16.mxu1 %v1985_v14  ;;  %1411 = vperm.xlu0 %1754, %v1118_v25  }
  0x25   : > { %1581 = vmatmul.mubr.msk.f32.vlgmr.msra.gmra.mrb[0].mxu0 %vm400_vm0, %v372_v21  ;;  %p1782_p5 = pnand %p1781_p3, %p1775_p0 }
  0x26   : > { %1585 = vmatmul.mubr.msk.f32.vlgmr.msra.gmra.mrb[0].mxu1 %vm400_vm0, %v372_v21  ;;  %483 = vmatprep.mubr.f32.mxu0 %v1852_v1 }
  0x27   : > { %572 = vmatprep.mubr.f32.mxu1 %v1852_v1  ;;  %1631 = vmatpush1.bf16.msra.mxu0 %v1987_v15 }
  0x28   : > { %1635 = vmatpush1.bf16.msra.mxu1 %v1993_v19 }
  0x29   : > { %1582 = vmatmul.mubr.msk.f32.gmra.mrb[2].mxu0 %vm400_vm0, %v373_v24 }
  0x2a   : > { %1586 = vmatmul.mubr.msk.f32.gmra.mrb[2].mxu1 %vm400_vm0, %v373_v24  ;;  %489 = vmatprep.mubr.f32.mxu0 %v1852_v1 }
  0x2b   : > { %578 = vmatprep.mubr.f32.mxu1 %v1852_v1 }
  0x2d   : > { %1583 = vmatmul.mubr.msk.f32.gmra.mrb[4].mxu0 %vm400_vm0, %v374_v26 }
  0x2e   : > { %1587 = vmatmul.mubr.msk.f32.gmra.mrb[4].mxu1 %vm400_vm0, %v374_v26  ;;  %495 = vmatprep.mubr.f32.mxu0 %v1852_v1 }
  0x2f   : > { %584 = vmatprep.mubr.f32.mxu1 %v1852_v1 }
  0x31   : > { %1584 = vmatmul.mubr.msk.f32.gmra.mrb[6].mxu0 %vm400_vm0, %v375_v27 }
  0x32   : > { %1588 = vmatmul.mubr.msk.f32.gmra.mrb[6].mxu1 %vm400_vm0, %v375_v27  ;;  %727 = vmatprep.mubr.f32.mxu0 %v1852_v1 }
  0x33   : > { %816 = vmatprep.mubr.f32.mxu1 %v1852_v1 }
  0x35   : > { %1589 = vmatmul.mubr.msk.f32.vlgmr.msra.gmra.mrb[8].mxu0 %vm400_vm0, %v643_v28 }
  0x36   : > { %1593 = vmatmul.mubr.msk.f32.vlgmr.msra.gmra.mrb[8].mxu1 %vm400_vm0, %v643_v28  ;;  %733 = vmatprep.mubr.f32.mxu0 %v1852_v1 }
  0x37   : > { %822 = vmatprep.mubr.f32.mxu1 %v1852_v1 }
  0x39   : > { %1590 = vmatmul.mubr.msk.f32.gmra.mrb[10].mxu0 %vm400_vm0, %v644_v29 }
  0x3a   : > { %1594 = vmatmul.mubr.msk.f32.gmra.mrb[10].mxu1 %vm400_vm0, %v644_v29  ;;  %739 = vmatprep.mubr.f32.mxu0 %v1852_v1 }
  0x3b   : > { %828 = vmatprep.mubr.f32.mxu1 %v1852_v1 }
  0x3d   : > { %1591 = vmatmul.mubr.msk.f32.gmra.mrb[12].mxu0 %vm400_vm0, %v645_v30 }
  0x3e   : > { %1595 = vmatmul.mubr.msk.f32.gmra.mrb[12].mxu1 %vm400_vm0, %v645_v30  ;;  %745 = vmatprep.mubr.f32.mxu0 %v1852_v1 }
  0x3f   : > { %834 = vmatprep.mubr.f32.mxu1 %v1852_v1 }
  0x41   : > { %1592 = vmatmul.mubr.msk.f32.gmra.mrb[14].mxu0 %vm400_vm0, %v646_v31 }
  0x42   : > { %1596 = vmatmul.mubr.msk.f32.gmra.mrb[14].mxu1 %vm400_vm0, %v646_v31  ;;  %918 = vmatprep.mubr.f32.mxu0 %v1852_v1 }
  0x43   : > { %1007 = vmatprep.mubr.f32.mxu1 %v1852_v1 }
  0x93   : > { %v383_v32 = vpop.permute.xlu0 %382  ;;  %v393_v55 = vpop.permute.xlu1 %392 }
  0x97   : > { %v388_v42 = vpop.permute.xlu0 %387  ;;  %v398_v20 = vpop.permute.xlu1 %397 }
  0xf8   : > { %v479_v33 = vpop.f32.mrb[0].mxu0 }
  0xf9   : > { %v480_v34 = vadd.f32 %v479_v33, %v383_v32  ;;  %v568_v35 = vpop.f32.mrb[0].mxu1  ;;  %v481_v36 = vpop.f32.mrb[1].mxu0 }
  0xfa   : > { %v569_v37 = vadd.f32 %v568_v35, %v383_v32  ;;  %v482_v38 = vadd.f32 %v481_v36, %v383_v32  ;;  %v570_v39 = vpop.f32.mrb[1].mxu1 }
  0xfb   : > { %v607_v40 = vmul.f32 0.01, %v480_v34  ;;  %v571_v41 = vadd.f32 %v570_v39, %v383_v32  ;;  %vm591_vm1 = vcmp.gt.f32.partialorder %v480_v34, 0.0 }
  0xfc   : > { %vm593_vm2 = vcmp.gt.f32.partialorder %v569_v37, 0.0  ;;  %v609_v43 = vmul.f32 0.01, %v569_v37  ;;  %v485_v44 = vpop.f32.mrb[2].mxu0  ;;  %vm592_vm3 = vcmp.gt.f32.partialorder %v482_v38, 0.0 }
  0xfd   : > { %v574_v45 = vpop.f32.mrb[2].mxu1  ;;  %v608_v46 = vmul.f32 0.01, %v482_v38  ;;  %v486_v47 = vadd.f32 %v485_v44, %v388_v42  ;;  %v487_v49 = vpop.f32.mrb[3].mxu0  ;;  %v623_v51 = vsel %vm591_vm1, %v480_v34, %v607_v40  ;;  %v610_v52 = vmul.f32 0.01, %v571_v41 }
  0xfe   : > { %v575_v48 = vadd.f32 %v574_v45, %v388_v42  ;;  %v576_v50 = vpop.f32.mrb[3].mxu1  ;;  %v488_v53 = vadd.f32 %v487_v49, %v388_v42  ;;  %vm594_vm6 = vcmp.gt.f32.partialorder %v571_v41, 0.0  ;;  %v625_v60 = vsel %vm593_vm2, %v569_v37, %v609_v43  ;;  %v639_v49 = vld [vmem:[%s2182_s3] sm:$0xff] }
  0xff   : > { %v577_v54 = vadd.f32 %v576_v50, %v388_v42  ;;  %vm595_vm4 = vcmp.gt.f32.partialorder %v486_v47, 0.0  ;;  %v611_v56 = vmul.f32 0.01, %v486_v47  ;;  %v624_v16 = vsel %vm592_vm3, %v482_v38, %v608_v46  ;;  %v640_v50 = vld [vmem:[%s2182_s3 + $0x8] sm:$0xff] }
 0x100   : > { %vm597_vm5 = vcmp.gt.f32.partialorder %v575_v48, 0.0  ;;  %v613_v57 = vmul.f32 0.01, %v575_v48  ;;  %vm596_vm7 = vcmp.gt.f32.partialorder %v488_v53, 0.0  ;;  %v612_v58 = vmul.f32 0.01, %v488_v53 }
 0x101   : > { %v614_v59 = vmul.f32 0.01, %v577_v54  ;;  %v627_v61 = vsel %vm595_vm4, %v486_v47, %v611_v56  ;;  %vm598_vm8 = vcmp.gt.f32.partialorder %v577_v54, 0.0  ;;  %v491_v63 = vpop.f32.mrb[4].mxu0  ;;  %v580_v0 = vpop.f32.mrb[4].mxu1  ;;  %v626_v17 = vsel %vm594_vm6, %v571_v41, %v610_v52 }
 0x102   : > { %v629_v62 = vsel %vm597_vm5, %v575_v48, %v613_v57  ;;  %v1638_v2 = vpack.c.bf16 %v627_v61, %v623_v51  ;;  %v492_v4 = vadd.f32 %v491_v63, %v393_v55  ;;  %v581_v5 = vadd.f32 %v580_v0, %v393_v55  ;;  %v493_v6 = vpop.f32.mrb[5].mxu0  ;;  %v582_v7 = vpop.f32.mrb[5].mxu1 }
 0x103   : > { %v1646_v3 = vpack.c.bf16 %v629_v62, %v625_v60  ;;  %v494_v8 = vadd.f32 %v493_v6, %v393_v55  ;;  %v583_v9 = vadd.f32 %v582_v7, %v393_v55  ;;  %v628_v12 = vsel %vm596_vm7, %v488_v53, %v612_v58  ;;  %v1040_v60 = vpop.permute.xlu1 %1039 }
 0x104   : > { %v497_v11 = vpop.f32.mrb[6].mxu0  ;;  %v615_v13 = vmul.f32 0.01, %v492_v4  ;;  %v630_v18 = vsel %vm598_vm8, %v577_v54, %v614_v59  ;;  %vm599_vm9 = vcmp.gt.f32.partialorder %v492_v4, 0.0  ;;  %vm601_vm10 = vcmp.gt.f32.partialorder %v581_v5, 0.0 }
 0x105   : > { %v617_v21 = vmul.f32 0.01, %v581_v5  ;;  %vm600_vm11 = vcmp.gt.f32.partialorder %v494_v8, 0.0  ;;  %v616_v22 = vmul.f32 0.01, %v494_v8  ;;  %vm602_vm12 = vcmp.gt.f32.partialorder %v583_v9, 0.0 }
 0x106   : > { %v498_v23 = vadd.f32 %v497_v11, %v398_v20  ;;  %v586_v24 = vpop.f32.mrb[6].mxu1  ;;  %v499_v25 = vpop.f32.mrb[7].mxu0  ;;  %v1636_v26 = vpack.c.bf16 %v628_v12, %v624_v16  ;;  %v618_v27 = vmul.f32 0.01, %v583_v9  ;;  %v1644_v31 = vpack.c.bf16 %v630_v18, %v626_v17 }
 0x107   : > { %v587_v28 = vadd.f32 %v586_v24, %v398_v20  ;;  %v500_v29 = vadd.f32 %v499_v25, %v398_v20  ;;  %v588_v30 = vpop.f32.mrb[7].mxu1  ;;  %v631_v32 = vsel %vm599_vm9, %v492_v4, %v615_v13  ;;  %v633_v37 = vsel %vm601_vm10, %v581_v5, %v617_v21 }
 0x108   : > { %vm603_vm13 = vcmp.gt.f32.partialorder %v498_v23, 0.0  ;;  %v619_v33 = vmul.f32 0.01, %v498_v23  ;;  %v589_v34 = vadd.f32 %v588_v30, %v398_v20  ;;  %1637 = vmatprep.subr.bf16.mxu0 %v1636_v26  ;;  %1645 = vmatprep.subr.bf16.mxu1 %v1644_v31  ;;  %v632_v42 = vsel %vm600_vm11, %v494_v8, %v616_v22 }
 0x109   : > { %vm605_vm14 = vcmp.gt.f32.partialorder %v587_v28, 0.0  ;;  %v621_v35 = vmul.f32 0.01, %v587_v28  ;;  %vm604_vm15 = vcmp.gt.f32.partialorder %v500_v29, 0.0  ;;  %v620_v36 = vmul.f32 0.01, %v500_v29  ;;  %1639 = vmatpush1.bf16.msra.mxu0 %v1638_v2  ;;  %1647 = vmatpush1.bf16.msra.mxu1 %v1646_v3 }
 0x10a   : > { %v635_v38 = vsel %vm603_vm13, %v498_v23, %v619_v33  ;;  %vm606_vm1 = vcmp.gt.f32.partialorder %v589_v34, 0.0  ;;  %v622_v39 = vmul.f32 0.01, %v589_v34  ;;  %v634_v46 = vsel %vm602_vm12, %v583_v9, %v618_v27 }
 0x10b   : > { %v1642_v40 = vpack.c.bf16 %v635_v38, %v631_v32  ;;  %v637_v41 = vsel %vm605_vm14, %v587_v28, %v621_v35  ;;  %v636_v43 = vsel %vm604_vm15, %v500_v29, %v620_v36  ;;  %vm841_vm2 = vcmask 261120  }
 0x10c   : > { %v1650_v44 = vpack.c.bf16 %v637_v41, %v633_v37  ;;  %v1640_v45 = vpack.c.bf16 %v636_v43, %v632_v42  ;;  %v638_v47 = vsel %vm606_vm1, %v589_v34, %v622_v39  ;;  %v1050_v37 = vpop.permute.xlu1 %1049 }
 0x10d   : > { %v1648_v48 = vpack.c.bf16 %v638_v47, %v634_v46 }
 0x10e   : > { %1641 = vmatprep.subr.bf16.mxu0 %v1640_v45 }
 0x10f   : > { %1649 = vmatprep.subr.bf16.mxu1 %v1648_v48  ;;  %1643 = vmatpush1.bf16.msra.mxu0 %v1642_v40 }
 0x110   : > { %1651 = vmatpush1.bf16.msra.mxu1 %v1650_v44  ;;  %1653 = vmatprep.subr.bf16.mxu0 %v1983_v10  ;;  %v641_v10 = vld [vmem:[%s2182_s3 + $0x10] sm:$0xff] }
 0x111   : > { %1657 = vmatprep.subr.bf16.mxu1 %v1985_v14  ;;  %v642_v14 = vld [vmem:[%s2182_s3 + $0x18] sm:$0xff] }
 0x112   : > { %1597 = vmatmul.mubr.msk.f32.vlgmr.msra.gmra.mrb[8].mxu0 %vm841_vm2, %v639_v49 }
 0x113   : > { %1601 = vmatmul.mubr.msk.f32.vlgmr.msra.gmra.mrb[8].mxu1 %vm841_vm2, %v639_v49  ;;  %924 = vmatprep.mubr.f32.mxu0 %v1852_v1 }
 0x114   : > { %1013 = vmatprep.mubr.f32.mxu1 %v1852_v1  ;;  %1655 = vmatpush1.bf16.msra.mxu0 %v1987_v15  ;;  %v1117_v15 = vld [vmem:[%s2186_s7] sm:$0x1] }
 0x115   : > { %1659 = vmatpush1.bf16.msra.mxu1 %v1993_v19  ;;  %v1035_v19 = vpop.permute.xlu0 %1034 }
 0x116   : > { %1598 = vmatmul.mubr.msk.f32.gmra.mrb[10].mxu0 %vm841_vm2, %v640_v50 }
 0x117   : > { %1602 = vmatmul.mubr.msk.f32.gmra.mrb[10].mxu1 %vm841_vm2, %v640_v50  ;;  %930 = vmatprep.mubr.f32.mxu0 %v1852_v1 }
 0x118   : > { %1019 = vmatprep.mubr.f32.mxu1 %v1852_v1 }
 0x119   : > { %v1045_v12 = vpop.permute.xlu0 %1044 }
 0x11a   : > { %1599 = vmatmul.mubr.msk.f32.gmra.mrb[12].mxu0 %vm841_vm2, %v641_v10 }
 0x11b   : > { %1603 = vmatmul.mubr.msk.f32.gmra.mrb[12].mxu1 %vm841_vm2, %v641_v10  ;;  %936 = vmatprep.mubr.f32.mxu0 %v1852_v1 }
 0x11c   : > { %1025 = vmatprep.mubr.f32.mxu1 %v1852_v1 }
 0x11e   : > { %1600 = vmatmul.mubr.msk.f32.gmra.mrb[14].mxu0 %vm841_vm2, %v642_v14 }
 0x11f   : > { %1604 = vmatmul.mubr.msk.f32.gmra.mrb[14].mxu1 %vm841_vm2, %v642_v14  ;;  %1186 = vmatprep.mubr.f32.mxu0 %v1852_v1 }
 0x120   : > { %1257 = vmatprep.mubr.f32.mxu1 %v1852_v1 }
 0x122   : > { %1605 = vmatmul.mubr.msk.f32.vlgmr.msra.gmra.mrb[16].mxu0 %vm400_vm0, %v1117_v15 }
 0x123   : > { %1606 = vmatmul.mubr.msk.f32.vlgmr.msra.gmra.mrb[16].mxu1 %vm400_vm0, %v1117_v15  ;;  %1331 = vmatprep.mubr.f32.mxu0 %v1852_v1 }
 0x124   : > { %1402 = vmatprep.mubr.f32.mxu1 %v1852_v1 }
 0x1e5   : > { %v920_v51 = vpop.f32.mrb[8].mxu0 }
 0x1e6   : > { %v1052_v52 = vadd.f32 %v1035_v19, %v920_v51  ;;  %v1009_v53 = vpop.f32.mrb[8].mxu1  ;;  %v922_v54 = vpop.f32.mrb[9].mxu0 }
 0x1e7   : > { %v1054_v55 = vadd.f32 %v1035_v19, %v1009_v53  ;;  %v1053_v56 = vadd.f32 %v1035_v19, %v922_v54  ;;  %v1011_v57 = vpop.f32.mrb[9].mxu1 }
 0x1e8   : > { %v1084_v58 = vmul.f32 0.01, %v1052_v52  ;;  %v1055_v59 = vadd.f32 %v1035_v19, %v1011_v57  ;;  %vm1068_vm3 = vcmp.gt.f32.partialorder %v1052_v52, 0.0 }
 0x1e9   : > { %vm1070_vm4 = vcmp.gt.f32.partialorder %v1054_v55, 0.0  ;;  %v1086_v61 = vmul.f32 0.01, %v1054_v55  ;;  %v926_v62 = vpop.f32.mrb[10].mxu0  ;;  %vm1069_vm0 = vcmp.gt.f32.partialorder %v1053_v56, 0.0 }
 0x1ea   : > { %v1015_v63 = vpop.f32.mrb[10].mxu1  ;;  %v1085_v0 = vmul.f32 0.01, %v1053_v56  ;;  %v1056_v2 = vadd.f32 %v1040_v60, %v926_v62  ;;  %v928_v3 = vpop.f32.mrb[11].mxu0  ;;  %v1100_v5 = vsel %vm1068_vm3, %v1052_v52, %v1084_v58  ;;  %v1087_v6 = vmul.f32 0.01, %v1055_v59 }
 0x1eb   : > { %v1058_v1 = vadd.f32 %v1040_v60, %v1015_v63  ;;  %v1017_v4 = vpop.f32.mrb[11].mxu1  ;;  %v1057_v7 = vadd.f32 %v1040_v60, %v928_v3  ;;  %vm1071_vm7 = vcmp.gt.f32.partialorder %v1055_v59, 0.0  ;;  %v1102_v17 = vsel %vm1070_vm4, %v1054_v55, %v1086_v61  ;;  %v1116_v62 = vld [vmem:[%s2185_s6] sm:$0x1] }
 0x1ec   : > { %v1059_v8 = vadd.f32 %v1040_v60, %v1017_v4  ;;  %vm1072_vm5 = vcmp.gt.f32.partialorder %v1056_v2, 0.0  ;;  %v1088_v9 = vmul.f32 0.01, %v1056_v2  ;;  %v1101_v34 = vsel %vm1069_vm0, %v1053_v56, %v1085_v0 }
 0x1ed   : > { %vm1074_vm6 = vcmp.gt.f32.partialorder %v1058_v1, 0.0  ;;  %v1090_v11 = vmul.f32 0.01, %v1058_v1  ;;  %vm1073_vm8 = vcmp.gt.f32.partialorder %v1057_v7, 0.0  ;;  %v1089_v13 = vmul.f32 0.01, %v1057_v7 }
 0x1ee   : > { %v1091_v16 = vmul.f32 0.01, %v1059_v8  ;;  %v1104_v18 = vsel %vm1072_vm5, %v1056_v2, %v1088_v9  ;;  %vm1075_vm9 = vcmp.gt.f32.partialorder %v1059_v8, 0.0  ;;  %v932_v21 = vpop.f32.mrb[12].mxu0  ;;  %v1021_v22 = vpop.f32.mrb[12].mxu1  ;;  %v1103_v35 = vsel %vm1071_vm7, %v1055_v59, %v1087_v6 }
 0x1ef   : > { %v1106_v20 = vsel %vm1074_vm6, %v1058_v1, %v1090_v11  ;;  %v1662_v23 = vpack.c.bf16 %v1104_v18, %v1100_v5  ;;  %v1060_v25 = vadd.f32 %v1045_v12, %v932_v21  ;;  %v1062_v26 = vadd.f32 %v1045_v12, %v1021_v22  ;;  %v934_v27 = vpop.f32.mrb[13].mxu0  ;;  %v1023_v28 = vpop.f32.mrb[13].mxu1 }
 0x1f0   : > { %v1670_v24 = vpack.c.bf16 %v1106_v20, %v1102_v17  ;;  %v1061_v29 = vadd.f32 %v1045_v12, %v934_v27  ;;  %v1063_v30 = vadd.f32 %v1045_v12, %v1023_v28  ;;  %v1105_v32 = vsel %vm1073_vm8, %v1057_v7, %v1089_v13  ;;  %v1412_v1 = vpop.permute.xlu0 %1411 }
 0x1f1   : > { %v938_v31 = vpop.f32.mrb[14].mxu0  ;;  %v1092_v33 = vmul.f32 0.01, %v1060_v25  ;;  %v1107_v36 = vsel %vm1075_vm9, %v1059_v8, %v1091_v16  ;;  %vm1076_vm10 = vcmp.gt.f32.partialorder %v1060_v25, 0.0  ;;  %vm1078_vm11 = vcmp.gt.f32.partialorder %v1062_v26, 0.0 }
 0x1f2   : > { %v1094_v38 = vmul.f32 0.01, %v1062_v26  ;;  %vm1077_vm12 = vcmp.gt.f32.partialorder %v1061_v29, 0.0  ;;  %v1093_v39 = vmul.f32 0.01, %v1061_v29  ;;  %vm1079_vm13 = vcmp.gt.f32.partialorder %v1063_v30, 0.0 }
 0x1f3   : > { %v1064_v40 = vadd.f32 %v1050_v37, %v938_v31  ;;  %v1027_v41 = vpop.f32.mrb[14].mxu1  ;;  %v940_v42 = vpop.f32.mrb[15].mxu0  ;;  %v1660_v43 = vpack.c.bf16 %v1105_v32, %v1101_v34  ;;  %v1095_v44 = vmul.f32 0.01, %v1063_v30  ;;  %v1668_v48 = vpack.c.bf16 %v1107_v36, %v1103_v35 }
 0x1f4   : > { %v1066_v45 = vadd.f32 %v1050_v37, %v1027_v41  ;;  %v1065_v46 = vadd.f32 %v1050_v37, %v940_v42  ;;  %v1029_v47 = vpop.f32.mrb[15].mxu1  ;;  %v1108_v49 = vsel %vm1076_vm10, %v1060_v25, %v1092_v33  ;;  %v1110_v19 = vsel %vm1078_vm11, %v1062_v26, %v1094_v38 }
 0x1f5   : > { %vm1080_vm14 = vcmp.gt.f32.partialorder %v1064_v40, 0.0  ;;  %v1096_v50 = vmul.f32 0.01, %v1064_v40  ;;  %v1067_v10 = vadd.f32 %v1050_v37, %v1029_v47  ;;  %1661 = vmatprep.subr.bf16.mxu0 %v1660_v43  ;;  %1669 = vmatprep.subr.bf16.mxu1 %v1668_v48  ;;  %v1109_v55 = vsel %vm1077_vm12, %v1061_v29, %v1093_v39 }
 0x1f6   : > { %vm1082_vm15 = vcmp.gt.f32.partialorder %v1066_v45, 0.0  ;;  %v1098_v14 = vmul.f32 0.01, %v1066_v45  ;;  %vm1081_vm1 = vcmp.gt.f32.partialorder %v1065_v46, 0.0  ;;  %v1097_v15 = vmul.f32 0.01, %v1065_v46  ;;  %1663 = vmatpush1.bf16.msra.mxu0 %v1662_v23  ;;  %1671 = vmatpush1.bf16.msra.mxu1 %v1670_v24 }
 0x1f7   : > { %v1112_v51 = vsel %vm1080_vm14, %v1064_v40, %v1096_v50  ;;  %vm1083_vm3 = vcmp.gt.f32.partialorder %v1067_v10, 0.0  ;;  %v1099_v52 = vmul.f32 0.01, %v1067_v10  ;;  %v1111_v59 = vsel %vm1079_vm13, %v1063_v30, %v1095_v44 }
 0x1f8   : > { %v1666_v53 = vpack.c.bf16 %v1112_v51, %v1108_v49  ;;  %v1114_v54 = vsel %vm1082_vm15, %v1066_v45, %v1098_v14  ;;  %v1113_v56 = vsel %vm1081_vm1, %v1065_v46, %v1097_v15  ;;  %v1414_v63 = vlaneseq }
 0x1f9   : > { %v1674_v57 = vpack.c.bf16 %v1114_v54, %v1110_v19  ;;  %v1664_v58 = vpack.c.bf16 %v1113_v56, %v1109_v55  ;;  %v1115_v60 = vsel %vm1083_vm3, %v1067_v10, %v1099_v52  ;;  %v1854_v28 = vmov 1966171168  }
 0x1fa   : > { %v1672_v61 = vpack.c.bf16 %v1115_v60, %v1111_v59  ;;  %v1415_v0 = vshrl.u32 %v1414_v63, 7  ;;  %v1453_v29 = vunpack.c.l.s4 %v1854_v28 }
 0x1fb   : > { %1665 = vmatprep.subr.bf16.mxu0 %v1664_v58 }
 0x1fc   : > { %1673 = vmatprep.subr.bf16.mxu1 %v1672_v61  ;;  %1667 = vmatpush1.bf16.msra.mxu0 %v1666_v53  ;;  %v1416_v2 = vsub.s32 0, %v1415_v0  ;;  %v1454_v30 = vunpack.c.0.s8 %v1453_v29 }
 0x1fd   : > { %1675 = vmatpush1.bf16.msra.mxu1 %v1674_v57 }
 0x1fe   : > { %v1417_v3 = vrot.slane %v1412_v1, %v1416_v2  ;;  %v1457_v33 = vsub.s32 %v1454_v30, %v1415_v0 }
 0x1ff   : > { %1607 = vmatmul.mubr.msk.f32.vlgmr.msra.gmra.mrb[16].mxu0 %vm841_vm2, %v1116_v62 }
 0x200   : > { %1608 = vmatmul.mubr.msk.f32.vlgmr.msra.gmra.mrb[16].mxu1 %vm841_vm2, %v1116_v62  ;;  %vm1477_vm2 = vcmp.lt.s32.totalorder %v1414_v63, 512 }
 0x2d2   : > { %v1333_v4 = vpop.f32.mrb[16].mxu0 }
 0x2d3   : > { %v1418_v5 = vadd.f32 %v1417_v3, %v1333_v4  ;;  %v1404_v6 = vpop.f32.mrb[16].mxu1  ;;  %v1335_v7 = vpop.f32.mrb[17].mxu0 }
 0x2d4   : > { %v1420_v8 = vadd.f32 %v1417_v3, %v1404_v6  ;;  %v1419_v9 = vadd.f32 %v1417_v3, %v1335_v7  ;;  %v1406_v11 = vpop.f32.mrb[17].mxu1 }
 0x2d5   : > { %v1609_v12 = vmul.f32 -1.442695, %v1418_v5  ;;  %v1421_v13 = vadd.f32 %v1417_v3, %v1406_v11 }
 0x2d6   : > { %v1611_v16 = vmul.f32 -1.442695, %v1420_v8  ;;  %v1610_v17 = vmul.f32 -1.442695, %v1419_v9 }
 0x2d7   : > { %1756 = vpow2.f32 %v1609_v12  ;;  %v1612_v18 = vmul.f32 -1.442695, %v1421_v13 }
 0x2d8   : > { %1758 = vpow2.f32 %v1611_v16 }
 0x2d9   : > { %1760 = vpow2.f32 %v1610_v17 }
 0x2da   : > { %1762 = vpow2.f32 %v1612_v18 }
 0x2e1   : > { %v1757_v20 = vpop.eup %1756 }
 0x2e2   : > { %v1759_v21 = vpop.eup %1758  ;;  %v1434_v22 = vadd.f32 1.0, %v1757_v20 }
 0x2e3   : > { %v1761_v23 = vpop.eup %1760  ;;  %v1436_v24 = vadd.f32 1.0, %v1759_v21 }
 0x2e4   : > { %v1763_v25 = vpop.eup %1762  ;;  %1764 = vrcp.f32 %v1434_v22  ;;  %v1435_v26 = vadd.f32 1.0, %v1761_v23 }
 0x2e5   : > { %1766 = vrcp.f32 %v1436_v24  ;;  %v1437_v27 = vadd.f32 1.0, %v1763_v25 }
 0x2e6   : > { %1768 = vrcp.f32 %v1435_v26 }
 0x2e7   : > { %1770 = vrcp.f32 %v1437_v27 }
 0x2ee   : > { %v1765_v31 = vpop.eup %1764 }
 0x2ef   : > { %v1767_v32 = vpop.eup %1766 }
 0x2f0   : > { %v1769_v34 = vpop.eup %1768 }
 0x2f1   : > { %v1771_v35 = vpop.eup %1770  ;;  %v1450_v36 = vcombine.low %v1765_v31, %v1769_v34 }
 0x2f2   : > { %v1451_v37 = vcombine.low %v1767_v32, %v1771_v35 }
 0x2f3   : > { %v1458_v38 = vrot.slane %v1450_v36, %v1457_v33 }
 0x2f4   : > { %v1465_v39 = vrot.slane %v1451_v37, %v1457_v33 }
 0x2f6   : > { %v1466_v40 = vcombine.low %v1458_v38, %v1465_v39 }
 0x2f8   : > { %v1473_v41 = vrot.slane %v1466_v40, %v1457_v33 }
 0x2fa   : > { %1479 = vst.msk [vmem:[%s352_s28] sm:$0xf] %vm1477_vm2, %v1473_v41 }
 0x2fb   : > { %1785 = shalt.err (!%p1782_p5)
}
 0x2fc   : > { %s1786_s25 = scalar_lea.hbm %s2132_s8, 64  ;;  %s1790_s28 = scalar_lea.hbm %s2188_s9, 128 }
 0x2fd   : > { %p1787_p6 = scmp.ne.s32.totalorder %s2132_s8, %s1786_s25  ;;  %p1791_p10 = scmp.lt.u32.totalorder %s2132_s8, %s2188_s9 }
 0x2fe   : > { %p1792_p11 = scmp.lt.u32.totalorder %s1790_s28, %s1786_s25  ;;  %p1794_p13 = scmp.lt.u32.totalorder %s1786_s25, %s2132_s8 }
 0x2ff   : > { %p1788_p7 = pnand %p1787_p6, %p1949_p4 }
 0x300   : > { %p1793_p12 = por %p1792_p11, %p1791_p10 }
 0x301   : > { %p1789_p9 = pneg %p1788_p7 }
 0x302   : > { %p1795_p0 = por %p1794_p13, %p1793_p12 }
 0x304   : > { %p1796_p1 = pnand %p1795_p0, %p1789_p9 }
 0x306   : > { %1799 = shalt.err (!%p1796_p1)
}
 0x307   : > { %1696 = dma.vmem_to_hbm [thread:$0]  (%p1949_p4), %s2134_s29, 64, %s2132_s8, %s1481_s17  }
 0x308 PF: > { %p1702_p2 = scmp.ge.s32.totalorder %s1850_s16, 2  ;;  %s1509_s19 = sand.u32 1, %s1830_s11  }
 0x309   : > { %s1510_s14 = scalar_lea.sflag [#allocation4], %s1509_s19 }
 0x30a   : > { %p1699_p3 = pnand %p1702_p2, %p1956_p8 }
 0x30c   : > { %1825 = dma.done.wait (!%p1699_p3), %s1510_s14, 64  }
 0x30d   : > { %1827 = vsyncadd (!%p1699_p3), %s1510_s14, 4294967232  ;;  %s24_s16 = sadd.s32 1, %s1850_s16   ;;  %s2191_s11 = smov %s1834_s12 }
 0x30e   : > { %p21_p5 = scmp.ge.s32.totalorder %s24_s16, 4   ;;  %s2192_s12 = smov %s1838_s13 }
 0x30f   : > { %s2193_s13 = smov %s1962_s23  ;;  %s2194_s14 = smov %s1846_s15 }
 0x310   : > { %s2195_s15 = smov %s2197_s18  ;;  %23 = sbr.rel (!%p21_p5) target bundleno = 7 (0x7), region = 91 }
 0x317   :  { %1515 = vsyncpa [#allocation4], 1 }
 0x318   :  { %1517 = vsyncpa [#allocation4 + $0x1], 1 }

</bundles_post_ra>
